<compile_context>
chip_gen: v6e
topology: v6e:2x2x1
jax: 0.10.0
libtpu: 0.0.40
codegen_flags: <defaults>
</compile_context>

<pallas_src>
import functools

import jax
import jax.numpy as jnp
from jax.experimental import pallas as pl
from jax.experimental.pallas import tpu as pltpu


# ----------------------------------------------------------------------------
# Kernel 1: router (f32).  Single block; outputs routes + max route prob.
# ----------------------------------------------------------------------------
def router_kernel(x_ref, w_sw_ref, b_sw_ref, routes_ref, pmax_ref, *, n_experts):
    x = x_ref[...]                                                        # [Tp, D] f32
    logits = jnp.dot(x, w_sw_ref[...], preferred_element_type=jnp.float32) + b_sw_ref[...]
    m = jnp.max(logits, axis=-1, keepdims=True)
    ex = jnp.exp(logits - m)
    inv = pl.reciprocal(jnp.sum(ex, axis=-1, keepdims=True), approx=True)  # EUP, not VALU
    probs = ex * inv                                                       # [Tp, E]
    pmax = jnp.max(probs, axis=-1, keepdims=True)                          # [Tp, 1]
    eids = jax.lax.broadcasted_iota(jnp.int32, probs.shape, 1)
    # first index attaining the max (matches torch.max / jnp.argmax tie-breaking);
    # pmax is computed from the SAME probs array, so the >= compare is exact.
    routes = jnp.min(jnp.where(probs >= pmax, eids, n_experts), axis=-1, keepdims=True)
    routes_ref[...] = routes
    pmax_ref[...] = pmax


# ----------------------------------------------------------------------------
# Kernel 2: grouped expert FFN over expert-sorted tokens (scalar-prefetch grid).
#   work tile w -> (row tile tile_row[w] of sorted tokens, expert tile_expert[w])
# ----------------------------------------------------------------------------
def grouped_ffn_kernel(tile_row_ref, tile_expert_ref, tile_first_ref, group_off_ref,
                       x_ref, w1_ref, b1_ref, w2_ref, b2_ref, out_ref, *, tm):
    w = pl.program_id(0)

    # Zero the output row tile on its first visit (it may be revisited by the next
    # expert when a group boundary falls inside the tile; buffer stays VMEM-resident).
    @pl.when(tile_first_ref[w] == 1)
    def _():
        out_ref[...] = jnp.zeros_like(out_ref)

    e = tile_expert_ref[w]
    row0 = tile_row_ref[w] * tm
    start = group_off_ref[e]
    end = group_off_ref[e + 1]
    rid = row0 + jax.lax.broadcasted_iota(jnp.int32, (tm, 1), 0)
    mask = (rid >= start) & (rid < end)                                   # rows owned by expert e

    # FFN: Linear -> ReLU -> Linear (dropout p=0.0 == identity).
    # bf16 MXU inputs, f32 accumulation; biases added in f32.
    x = x_ref[...]                                                        # [tm, D] bf16
    h = jnp.dot(x, w1_ref[0], preferred_element_type=jnp.float32) + b1_ref[0]
    h = jnp.maximum(h, 0.0).astype(jnp.bfloat16)
    o = jnp.dot(h, w2_ref[0], preferred_element_type=jnp.float32) + b2_ref[0]

    out_ref[...] = jnp.where(mask, o, out_ref[...])


# ----------------------------------------------------------------------------
# Wrapper: router pass -> sort/group metadata (JAX glue) -> grouped FFN pass.
# ----------------------------------------------------------------------------
def switch_ffn_forward(x, params, *, n_experts):
    B, S, D = x.shape
    T = B * S
    E = n_experts

    # Token row tile.  Keep it >= 2 tiles at tiny sizes so the grouped/boundary logic is
    # exercised; at realistic T use 128/256-row tiles (amortize ~0.35us/step grid cost).
    if T >= 1024:
        tm = 256
    elif T >= 256:
        tm = 128
    else:
        tm = 8
    Tp = ((T + tm - 1) // tm) * tm
    NT = Tp // tm
    W = NT + E - 1                      # static worst case: each group boundary splits a tile

    xf = x.reshape(T, D).astype(jnp.float32)
    xp = jnp.pad(xf, ((0, Tp - T), (0, 0)))

    # ---- 1. router (f32) ----------------------------------------------------
    routes2, pmax2 = pl.pallas_call(
        functools.partial(router_kernel, n_experts=E),
        out_shape=(jax.ShapeDtypeStruct((Tp, 1), jnp.int32),
                   jax.ShapeDtypeStruct((Tp, 1), jnp.float32)),
        grid=(1,),
        in_specs=[pl.BlockSpec((Tp, D), lambda i: (0, 0)),
                  pl.BlockSpec((D, E), lambda i: (0, 0)),
                  pl.BlockSpec((1, E), lambda i: (0, 0))],
        out_specs=(pl.BlockSpec((Tp, 1), lambda i: (0, 0)),
                   pl.BlockSpec((Tp, 1), lambda i: (0, 0))),
    )(xp, params["w_sw"], params["b_sw"])
    routes = routes2[:, 0]
    pmax = pmax2[:, 0]

    # ---- 2. glue: scale, stable sort by expert (== torch.cat order), metadata ----
    valid = jnp.arange(Tp) < T
    sort_key = jnp.where(valid, routes, E)                  # pad rows sort last
    order = jnp.argsort(sort_key, stable=True)

    xs = xp * pmax[:, None]
    xs = jnp.where(valid[:, None], xs, 0.0)
    x_sorted = xs[order].astype(jnp.bfloat16)                # [Tp, D] expert-grouped, bf16

    routes_real = routes[:T]
    group_sizes = jnp.sum(routes_real[:, None] == jnp.arange(E)[None, :], axis=0).astype(jnp.int32)
    group_off = jnp.concatenate(
        [jnp.zeros((1,), jnp.int32), jnp.cumsum(group_sizes)]).astype(jnp.int32)   # [E+1]

    starts, ends = group_off[:-1], group_off[1:]
    t_first = starts // tm
    counts = jnp.where(ends > starts, (ends + tm - 1) // tm - t_first, 0)           # row tiles per expert
    cum = jnp.cumsum(counts)
    cum0 = jnp.concatenate([jnp.zeros((1,), cum.dtype), cum])
    total = cum[-1]
    widx = jnp.arange(W)
    e_w = jnp.clip(jnp.searchsorted(cum, widx, side="right"), 0, E - 1)
    row_w = t_first[e_w] + (widx - cum0[e_w])
    is_pad = widx >= total
    # pad work tiles repeat (last row tile, last expert): either a no-op (empty mask)
    # or an idempotent recompute of the already-written tile.
    row_w = jnp.where(is_pad, NT - 1, row_w)
    e_w = jnp.where(is_pad, E - 1, e_w)
    tile_row = row_w.astype(jnp.int32)
    tile_expert = e_w.astype(jnp.int32)
    tile_first = jnp.concatenate(
        [jnp.ones((1,), jnp.bool_), tile_row[1:] != tile_row[:-1]]).astype(jnp.int32)

    # ---- 3. grouped expert FFN ------------------------------------------------
    grid_spec = pltpu.PrefetchScalarGridSpec(
        num_scalar_prefetch=4,
        grid=(W,),
        in_specs=[
            pl.BlockSpec((tm, D), lambda w, tr, te, tf, go: (tr[w], 0)),       # sorted tokens
            pl.BlockSpec((1, D, D), lambda w, tr, te, tf, go: (te[w], 0, 0)),  # W1[e] (bf16)
            pl.BlockSpec((1, 1, D), lambda w, tr, te, tf, go: (te[w], 0, 0)),  # b1[e] (f32)
            pl.BlockSpec((1, D, D), lambda w, tr, te, tf, go: (te[w], 0, 0)),  # W2[e] (bf16)
            pl.BlockSpec((1, 1, D), lambda w, tr, te, tf, go: (te[w], 0, 0)),  # b2[e] (f32)
        ],
        out_specs=pl.BlockSpec((tm, D), lambda w, tr, te, tf, go: (tr[w], 0)),
    )
    out_sorted = pl.pallas_call(
        functools.partial(grouped_ffn_kernel, tm=tm),
        out_shape=jax.ShapeDtypeStruct((Tp, D), jnp.float32),
        grid_spec=grid_spec,
        compiler_params=pltpu.CompilerParams(
            # output row tiles are revisited at group boundaries -> sequential axis
            dimension_semantics=("arbitrary",),
            vmem_limit_bytes=64 * 1024 * 1024,
        ),
    )(tile_row, tile_expert, tile_first, group_off,
      x_sorted,
      params["w1"].astype(jnp.bfloat16), params["b1"],
      params["w2"].astype(jnp.bfloat16), params["b2"])

    # Already in expert-grouped (torch.cat) order: drop pad rows, reshape.
    return out_sorted[:T].reshape(B, S, D)


# ----------------------------------------------------------------------------
# Deterministic parameter init (PyTorch nn.Linear-style uniform), weights as [in, out].
# ----------------------------------------------------------------------------
def linear_init(key, fan_in, fan_out):
    kw, kb = jax.random.split(key)
    bound = 1.0 / jnp.sqrt(jnp.float32(fan_in))
    w = jax.random.uniform(kw, (fan_in, fan_out), jnp.float32, -bound, bound)
    b = jax.random.uniform(kb, (1, fan_out), jnp.float32, -bound, bound)
    return w, b


def init_params(key, d_model, n_experts):
    keys = jax.random.split(key, 2 * n_experts + 1)
    w_sw, b_sw = linear_init(keys[0], d_model, n_experts)
    w1s, b1s, w2s, b2s = [], [], [], []
    for e in range(n_experts):
        w1, b1 = linear_init(keys[1 + 2 * e], d_model, d_model)
        w2, b2 = linear_init(keys[2 + 2 * e], d_model, d_model)
        w1s.append(w1); b1s.append(b1); w2s.append(w2); b2s.append(b2)
    return dict(
        w_sw=w_sw, b_sw=b_sw,
        w1=jnp.stack(w1s), b1=jnp.stack(b1s)[:, None, :].reshape(n_experts, 1, d_model),
        w2=jnp.stack(w2s), b2=jnp.stack(b2s)[:, None, :].reshape(n_experts, 1, d_model),
    )


# ----------------------------------------------------------------------------
# Plain-JAX reference mirroring the PyTorch forward (run eagerly, f32).
# ----------------------------------------------------------------------------
def reference_forward(x, params, *, n_experts):
    B, S, D = x.shape
    hp = jax.lax.Precision.HIGHEST
    xf = x.reshape(-1, D)
    logits = jnp.dot(xf, params["w_sw"], precision=hp) + params["b_sw"]
    probs = jax.nn.softmax(logits, axis=-1)
    pmax = jnp.max(probs, axis=-1)
    routes = jnp.argmax(probs, axis=-1)
    xs = xf * pmax[:, None]
    outs = []
    for e in range(n_experts):
        idx = jnp.nonzero(routes == e)[0]   # concrete (eager) — may be empty
        h = jax.nn.relu(jnp.dot(xs[idx], params["w1"][e], precision=hp) + params["b1"][e, 0])
        outs.append(jnp.dot(h, params["w2"][e], precision=hp) + params["b2"][e, 0])
    return jnp.concatenate(outs, axis=0).reshape(B, S, D)


if __name__ == "__main__":
    BATCH, SEQ, D_MODEL, N_EXPERTS = 2, 8, 32, 4   # capacity_factor / drop_tokens unused in forward

    key = jax.random.PRNGKey(0)
    kx, kp = jax.random.split(key)
    x = jax.random.normal(kx, (BATCH, SEQ, D_MODEL), jnp.float32)
    params = init_params(kp, D_MODEL, N_EXPERTS)

    fwd = jax.jit(functools.partial(switch_ffn_forward, n_experts=N_EXPERTS))
    out = jax.block_until_ready(fwd(x, params))

    ref = reference_forward(x, params, n_experts=N_EXPERTS)
    assert out.shape == (BATCH, SEQ, D_MODEL)
    max_err = float(jnp.max(jnp.abs(out - ref)))
    # bf16 MXU inputs (f32 accumulation) vs f32 reference -> loosened tolerance
    assert jnp.allclose(out, ref, atol=2e-2, rtol=2e-2), max_err

    print("KERNEL_OK")
</pallas_src>

<mosaic_0001>
module attributes {stable_mosaic.version = 11 : i64} {
  func.func @router_kernel(%arg0: i32, %arg1: memref<16x32xf32, #tpu.memory_space<vmem>>, %arg2: memref<32x4xf32, #tpu.memory_space<vmem>>, %arg3: memref<1x4xf32, #tpu.memory_space<vmem>>, %arg4: memref<16x1xi32, #tpu.memory_space<vmem>>, %arg5: memref<16x1xf32, #tpu.memory_space<vmem>>) attributes {dimension_semantics = [#tpu.dimension_semantics<arbitrary>], iteration_bounds = array<i64: 1>, scalar_prefetch = 0 : i64, scratch_operands = 0 : i64, tpu.core_type = #tpu.core_type<tc>, window_params = [{pipeline_mode = #tpu.pipeline_mode<synchronous>, transform_indices = @transform_0, window_bounds = array<i64: 16, 32>}, {pipeline_mode = #tpu.pipeline_mode<synchronous>, transform_indices = @transform_1, window_bounds = array<i64: 32, 4>}, {pipeline_mode = #tpu.pipeline_mode<synchronous>, transform_indices = @transform_2, window_bounds = array<i64: 1, 4>}, {pipeline_mode = #tpu.pipeline_mode<synchronous>, transform_indices = @transform_3, window_bounds = array<i64: 16, 1>}, {pipeline_mode = #tpu.pipeline_mode<synchronous>, transform_indices = @transform_4, window_bounds = array<i64: 16, 1>}]} {
    %c0 = arith.constant 0 : index
    %c0_0 = arith.constant 0 : index
    %0 = vector.load %arg1[%c0, %c0_0] : memref<16x32xf32, #tpu.memory_space<vmem>>, vector<16x32xf32>
    %c0_1 = arith.constant 0 : index
    %c0_2 = arith.constant 0 : index
    %1 = vector.load %arg2[%c0_1, %c0_2] : memref<32x4xf32, #tpu.memory_space<vmem>>, vector<32x4xf32>
    %cst = arith.constant dense<0.000000e+00> : vector<16x4xf32>
    %2 = tpu.matmul %0, %1, %cst {dimension_numbers = #tpu.dot_dimension_numbers<[1], [0], [0], [1], [0, 0, 1, 1], [], []>} : vector<16x32xf32>, vector<32x4xf32>, vector<16x4xf32> -> vector<16x4xf32>
    %c0_3 = arith.constant 0 : index
    %c0_4 = arith.constant 0 : index
    %3 = vector.load %arg3[%c0_3, %c0_4] : memref<1x4xf32, #tpu.memory_space<vmem>>, vector<1x4xf32>
    %4 = vector.broadcast %3 : vector<1x4xf32> to vector<16x4xf32>
    %5 = arith.addf %2, %4 : vector<16x4xf32>
    %cst_5 = arith.constant dense<0xFF800000> : vector<16xf32>
    %6 = vector.multi_reduction <maximumf>, %5, %cst_5 [1] : vector<16x4xf32> to vector<16xf32>
    %7 = vector.shape_cast %6 : vector<16xf32> to vector<16x1xf32>
    %8 = vector.broadcast %7 : vector<16x1xf32> to vector<16x4xf32>
    %9 = arith.subf %5, %8 : vector<16x4xf32>
    %10 = math.exp %9 : vector<16x4xf32>
    %cst_6 = arith.constant dense<0.000000e+00> : vector<16xf32>
    %11 = vector.multi_reduction <add>, %10, %cst_6 [1] : vector<16x4xf32> to vector<16xf32>
    %12 = vector.shape_cast %11 : vector<16xf32> to vector<16x1xf32>
    %13 = tpu.reciprocal %12 {approx = true} : vector<16x1xf32> -> vector<16x1xf32>
    %14 = vector.broadcast %13 : vector<16x1xf32> to vector<16x4xf32>
    %15 = arith.mulf %10, %14 : vector<16x4xf32>
    %cst_7 = arith.constant dense<0xFF800000> : vector<16xf32>
    %16 = vector.multi_reduction <maximumf>, %15, %cst_7 [1] : vector<16x4xf32> to vector<16xf32>
    %17 = vector.shape_cast %16 : vector<16xf32> to vector<16x1xf32>
    %18 = tpu.iota {dimensions = array<i32: 1>} : vector<16x4xi32>
    %19 = vector.broadcast %17 : vector<16x1xf32> to vector<16x4xf32>
    %20 = arith.cmpf oge, %15, %19 : vector<16x4xf32>
    %c4_i32 = arith.constant 4 : i32
    %21 = vector.broadcast %c4_i32 : i32 to vector<16x4xi32>
    %22 = arith.select %20, %18, %21 : vector<16x4xi1>, vector<16x4xi32>
    %cst_8 = arith.constant dense<2147483647> : vector<16xi32>
    %23 = vector.multi_reduction <minsi>, %22, %cst_8 [1] : vector<16x4xi32> to vector<16xi32>
    %24 = vector.shape_cast %23 : vector<16xi32> to vector<16x1xi32>
    %c0_9 = arith.constant 0 : index
    %c0_10 = arith.constant 0 : index
    %25 = vector.load %arg4[%c0_9, %c0_10] : memref<16x1xi32, #tpu.memory_space<vmem>>, vector<16x1xi32>
    tpu.vector_store %arg4[%c0_9, %c0_10], %24 {strides = array<i32>} : memref<16x1xi32, #tpu.memory_space<vmem>>, vector<16x1xi32>,
    %c0_11 = arith.constant 0 : index
    %c0_12 = arith.constant 0 : index
    %26 = vector.load %arg5[%c0_11, %c0_12] : memref<16x1xf32, #tpu.memory_space<vmem>>, vector<16x1xf32>
    tpu.vector_store %arg5[%c0_11, %c0_12], %17 {strides = array<i32>} : memref<16x1xf32, #tpu.memory_space<vmem>>, vector<16x1xf32>,
    return
  }
  func.func @transform_0(%arg0: i32) -> (i32, i32) {
    %c0_i32 = arith.constant 0 : i32
    %c0_i32_0 = arith.constant 0 : i32
    %c0_i32_1 = arith.constant 0 : i32
    return %c0_i32, %c0_i32_0 : i32, i32
  }
  func.func @transform_1(%arg0: i32) -> (i32, i32) {
    %c0_i32 = arith.constant 0 : i32
    %c0_i32_0 = arith.constant 0 : i32
    %c0_i32_1 = arith.constant 0 : i32
    return %c0_i32, %c0_i32_0 : i32, i32
  }
  func.func @transform_2(%arg0: i32) -> (i32, i32) {
    %c0_i32 = arith.constant 0 : i32
    %c0_i32_0 = arith.constant 0 : i32
    %c0_i32_1 = arith.constant 0 : i32
    return %c0_i32, %c0_i32_0 : i32, i32
  }
  func.func @transform_3(%arg0: i32) -> (i32, i32) {
    %c0_i32 = arith.constant 0 : i32
    %c0_i32_0 = arith.constant 0 : i32
    %c0_i32_1 = arith.constant 0 : i32
    return %c0_i32, %c0_i32_0 : i32, i32
  }
  func.func @transform_4(%arg0: i32) -> (i32, i32) {
    %c0_i32 = arith.constant 0 : i32
    %c0_i32_0 = arith.constant 0 : i32
    %c0_i32_1 = arith.constant 0 : i32
    return %c0_i32, %c0_i32_0 : i32, i32
  }
}

module attributes {stable_mosaic.version = 11 : i64} {
  func.func @grouped_ffn_kernel(%arg0: i32, %arg1: memref<5xi32, #tpu.memory_space<smem>>, %arg2: memref<5xi32, #tpu.memory_space<smem>>, %arg3: memref<5xi32, #tpu.memory_space<smem>>, %arg4: memref<5xi32, #tpu.memory_space<smem>>, %arg5: memref<8x32xbf16, #tpu.memory_space<vmem>>, %arg6: memref<1x32x32xbf16, #tpu.memory_space<vmem>>, %arg7: memref<1x1x32xf32, #tpu.memory_space<vmem>>, %arg8: memref<1x32x32xbf16, #tpu.memory_space<vmem>>, %arg9: memref<1x1x32xf32, #tpu.memory_space<vmem>>, %arg10: memref<8x32xf32, #tpu.memory_space<vmem>>) attributes {dimension_semantics = [#tpu.dimension_semantics<arbitrary>], iteration_bounds = array<i64: 5>, scalar_prefetch = 4 : i64, scratch_operands = 0 : i64, tpu.core_type = #tpu.core_type<tc>, window_params = [{transform_indices = @transform_0, window_bounds = array<i64: 8, 32>}, {transform_indices = @transform_1, window_bounds = array<i64: 1, 32, 32>}, {transform_indices = @transform_2, window_bounds = array<i64: 1, 1, 32>}, {transform_indices = @transform_3, window_bounds = array<i64: 1, 32, 32>}, {transform_indices = @transform_4, window_bounds = array<i64: 1, 1, 32>}, {transform_indices = @transform_5, window_bounds = array<i64: 8, 32>}]} {
    %0 = arith.index_cast %arg0 : i32 to index
    %1 = memref.load %arg3[%0] : memref<5xi32, #tpu.memory_space<smem>>
    %c1_i32 = arith.constant 1 : i32
    %2 = arith.cmpi eq, %1, %c1_i32 : i32
    %3 = arith.extui %2 : i1 to i32
    %c0_i32 = arith.constant 0 : i32
    %4 = arith.cmpi ne, %3, %c0_i32 : i32
    scf.if %4 {
      %cst_20 = arith.constant 0.000000e+00 : f32
      %46 = vector.broadcast %cst_20 : f32 to vector<8x32xf32>
      %c0_21 = arith.constant 0 : index
      %c0_22 = arith.constant 0 : index
      %47 = vector.load %arg10[%c0_21, %c0_22] : memref<8x32xf32, #tpu.memory_space<vmem>>, vector<8x32xf32>
      tpu.vector_store %arg10[%c0_21, %c0_22], %46 {strides = array<i32>} : memref<8x32xf32, #tpu.memory_space<vmem>>, vector<8x32xf32>,
    } else {
    }
    %5 = arith.index_cast %arg0 : i32 to index
    %6 = memref.load %arg2[%5] : memref<5xi32, #tpu.memory_space<smem>>
    %7 = arith.index_cast %arg0 : i32 to index
    %8 = memref.load %arg1[%7] : memref<5xi32, #tpu.memory_space<smem>>
    %c8_i32 = arith.constant 8 : i32
    %9 = arith.muli %8, %c8_i32 : i32
    %10 = arith.index_cast %6 : i32 to index
    %11 = memref.load %arg4[%10] : memref<5xi32, #tpu.memory_space<smem>>
    %c1_i32_0 = arith.constant 1 : i32
    %12 = arith.addi %6, %c1_i32_0 : i32
    %13 = arith.index_cast %12 : i32 to index
    %14 = memref.load %arg4[%13] : memref<5xi32, #tpu.memory_space<smem>>
    %15 = tpu.iota {dimensions = array<i32: 0>} : vector<8x1xi32>
    %16 = vector.broadcast %9 : i32 to vector<8x1xi32>
    %17 = arith.addi %16, %15 : vector<8x1xi32>
    %18 = vector.broadcast %11 : i32 to vector<8x1xi32>
    %19 = arith.cmpi sge, %17, %18 : vector<8x1xi32>
    %20 = vector.broadcast %14 : i32 to vector<8x1xi32>
    %21 = arith.cmpi slt, %17, %20 : vector<8x1xi32>
    %22 = arith.andi %19, %21 : vector<8x1xi1>
    %c0 = arith.constant 0 : index
    %c0_1 = arith.constant 0 : index
    %23 = vector.load %arg5[%c0, %c0_1] : memref<8x32xbf16, #tpu.memory_space<vmem>>, vector<8x32xbf16>
    %c0_2 = arith.constant 0 : index
    %c0_3 = arith.constant 0 : index
    %c0_4 = arith.constant 0 : index
    %24 = vector.load %arg6[%c0_2, %c0_3, %c0_4] : memref<1x32x32xbf16, #tpu.memory_space<vmem>>, vector<1x32x32xbf16>
    %25 = vector.shape_cast %24 : vector<1x32x32xbf16> to vector<32x32xbf16>
    %cst = arith.constant dense<0.000000e+00> : vector<8x32xf32>
    %26 = tpu.matmul %23, %25, %cst {dimension_numbers = #tpu.dot_dimension_numbers<[1], [0], [0], [1], [0, 0, 1, 1], [], []>} : vector<8x32xbf16>, vector<32x32xbf16>, vector<8x32xf32> -> vector<8x32xf32>
    %c0_5 = arith.constant 0 : index
    %c0_6 = arith.constant 0 : index
    %c0_7 = arith.constant 0 : index
    %27 = vector.load %arg7[%c0_5, %c0_6, %c0_7] : memref<1x1x32xf32, #tpu.memory_space<vmem>>, vector<1x1x32xf32>
    %28 = vector.shape_cast %27 : vector<1x1x32xf32> to vector<1x32xf32>
    %29 = vector.broadcast %28 : vector<1x32xf32> to vector<8x32xf32>
    %30 = arith.addf %26, %29 : vector<8x32xf32>
    %cst_8 = arith.constant 0.000000e+00 : f32
    %31 = vector.broadcast %cst_8 : f32 to vector<8x32xf32>
    %32 = arith.maximumf %30, %31 : vector<8x32xf32>
    %33 = arith.truncf %32 : vector<8x32xf32> to vector<8x32xbf16>
    %c0_9 = arith.constant 0 : index
    %c0_10 = arith.constant 0 : index
    %c0_11 = arith.constant 0 : index
    %34 = vector.load %arg8[%c0_9, %c0_10, %c0_11] : memref<1x32x32xbf16, #tpu.memory_space<vmem>>, vector<1x32x32xbf16>
    %35 = vector.shape_cast %34 : vector<1x32x32xbf16> to vector<32x32xbf16>
    %cst_12 = arith.constant dense<0.000000e+00> : vector<8x32xf32>
    %36 = tpu.matmul %33, %35, %cst_12 {dimension_numbers = #tpu.dot_dimension_numbers<[1], [0], [0], [1], [0, 0, 1, 1], [], []>} : vector<8x32xbf16>, vector<32x32xbf16>, vector<8x32xf32> -> vector<8x32xf32>
    %c0_13 = arith.constant 0 : index
    %c0_14 = arith.constant 0 : index
    %c0_15 = arith.constant 0 : index
    %37 = vector.load %arg9[%c0_13, %c0_14, %c0_15] : memref<1x1x32xf32, #tpu.memory_space<vmem>>, vector<1x1x32xf32>
    %38 = vector.shape_cast %37 : vector<1x1x32xf32> to vector<1x32xf32>
    %39 = vector.broadcast %38 : vector<1x32xf32> to vector<8x32xf32>
    %40 = arith.addf %36, %39 : vector<8x32xf32>
    %c0_16 = arith.constant 0 : index
    %c0_17 = arith.constant 0 : index
    %41 = vector.load %arg10[%c0_16, %c0_17] : memref<8x32xf32, #tpu.memory_space<vmem>>, vector<8x32xf32>
    %42 = vector.shape_cast %22 : vector<8x1xi1> to vector<8x1xi1>
    %43 = vector.broadcast %42 : vector<8x1xi1> to vector<8x32xi1>
    %44 = arith.select %43, %40, %41 : vector<8x32xi1>, vector<8x32xf32>
    %c0_18 = arith.constant 0 : index
    %c0_19 = arith.constant 0 : index
    %45 = vector.load %arg10[%c0_18, %c0_19] : memref<8x32xf32, #tpu.memory_space<vmem>>, vector<8x32xf32>
    tpu.vector_store %arg10[%c0_18, %c0_19], %44 {strides = array<i32>} : memref<8x32xf32, #tpu.memory_space<vmem>>, vector<8x32xf32>,
    return
  }
  func.func @transform_0(%arg0: i32, %arg1: memref<5xi32, #tpu.memory_space<smem>>, %arg2: memref<5xi32, #tpu.memory_space<smem>>, %arg3: memref<5xi32, #tpu.memory_space<smem>>, %arg4: memref<5xi32, #tpu.memory_space<smem>>) -> (i32, i32) {
    %0 = arith.index_cast %arg0 : i32 to index
    %1 = memref.load %arg1[%0] : memref<5xi32, #tpu.memory_space<smem>>
    %c0_i32 = arith.constant 0 : i32
    %c0_i32_0 = arith.constant 0 : i32
    return %1, %c0_i32 : i32, i32
  }
  func.func @transform_1(%arg0: i32, %arg1: memref<5xi32, #tpu.memory_space<smem>>, %arg2: memref<5xi32, #tpu.memory_space<smem>>, %arg3: memref<5xi32, #tpu.memory_space<smem>>, %arg4: memref<5xi32, #tpu.memory_space<smem>>) -> (i32, i32, i32) {
    %0 = arith.index_cast %arg0 : i32 to index
    %1 = memref.load %arg2[%0] : memref<5xi32, #tpu.memory_space<smem>>
    %c0_i32 = arith.constant 0 : i32
    %c0_i32_0 = arith.constant 0 : i32
    %c0_i32_1 = arith.constant 0 : i32
    return %1, %c0_i32, %c0_i32_0 : i32, i32, i32
  }
  func.func @transform_2(%arg0: i32, %arg1: memref<5xi32, #tpu.memory_space<smem>>, %arg2: memref<5xi32, #tpu.memory_space<smem>>, %arg3: memref<5xi32, #tpu.memory_space<smem>>, %arg4: memref<5xi32, #tpu.memory_space<smem>>) -> (i32, i32, i32) {
    %0 = arith.index_cast %arg0 : i32 to index
    %1 = memref.load %arg2[%0] : memref<5xi32, #tpu.memory_space<smem>>
    %c0_i32 = arith.constant 0 : i32
    %c0_i32_0 = arith.constant 0 : i32
    %c0_i32_1 = arith.constant 0 : i32
    return %1, %c0_i32, %c0_i32_0 : i32, i32, i32
  }
  func.func @transform_3(%arg0: i32, %arg1: memref<5xi32, #tpu.memory_space<smem>>, %arg2: memref<5xi32, #tpu.memory_space<smem>>, %arg3: memref<5xi32, #tpu.memory_space<smem>>, %arg4: memref<5xi32, #tpu.memory_space<smem>>) -> (i32, i32, i32) {
    %0 = arith.index_cast %arg0 : i32 to index
    %1 = memref.load %arg2[%0] : memref<5xi32, #tpu.memory_space<smem>>
    %c0_i32 = arith.constant 0 : i32
    %c0_i32_0 = arith.constant 0 : i32
    %c0_i32_1 = arith.constant 0 : i32
    return %1, %c0_i32, %c0_i32_0 : i32, i32, i32
  }
  func.func @transform_4(%arg0: i32, %arg1: memref<5xi32, #tpu.memory_space<smem>>, %arg2: memref<5xi32, #tpu.memory_space<smem>>, %arg3: memref<5xi32, #tpu.memory_space<smem>>, %arg4: memref<5xi32, #tpu.memory_space<smem>>) -> (i32, i32, i32) {
    %0 = arith.index_cast %arg0 : i32 to index
    %1 = memref.load %arg2[%0] : memref<5xi32, #tpu.memory_space<smem>>
    %c0_i32 = arith.constant 0 : i32
    %c0_i32_0 = arith.constant 0 : i32
    %c0_i32_1 = arith.constant 0 : i32
    return %1, %c0_i32, %c0_i32_0 : i32, i32, i32
  }
  func.func @transform_5(%arg0: i32, %arg1: memref<5xi32, #tpu.memory_space<smem>>, %arg2: memref<5xi32, #tpu.memory_space<smem>>, %arg3: memref<5xi32, #tpu.memory_space<smem>>, %arg4: memref<5xi32, #tpu.memory_space<smem>>) -> (i32, i32) {
    %0 = arith.index_cast %arg0 : i32 to index
    %1 = memref.load %arg1[%0] : memref<5xi32, #tpu.memory_space<smem>>
    %c0_i32 = arith.constant 0 : i32
    %c0_i32_0 = arith.constant 0 : i32
    return %1, %c0_i32 : i32, i32
  }
}

</mosaic_0001>

<bundles_post_ra>
// kernel: custom-call.1
= control target key start
LH: loop header
LB: loop body
LE: loop exit
PB: predicated region body
PF: predicated region fallthrough
CT: control target
= control target key end

     0   :  { %s6_s0 = inlined_call_operand.vmem [shape: u32[5], index: 0, kind: output, shape index: {}]  }

// kernel: switch_ffn_forward.2
= control target key start
LH: loop header
LB: loop body
LE: loop exit
PB: predicated region body
PF: predicated region fallthrough
CT: control target
= control target key end

     0   :  { %vm29_vm0 = vcmask 261120   ;;  %vm111_vm1 = vcmask 31744   ;;  %v140_v31 = vlaneseq  ;;  %vm176_vm2 = vcmask 7168   ;;  %s289_s1 = inlined_call_operand.vmem [shape: f32[32,4], index: 1, kind: input, shape index: {}]   ;;  %s290_s0 = inlined_call_operand.vmem [shape: f32[16,32], index: 0, kind: input, shape index: {}]   ;;  %s291_s2 = inlined_call_operand.vmem [shape: f32[1,4], index: 2, kind: input, shape index: {}]   ;;  %s292_s4 = inlined_call_operand.vmem [shape: f32[16,1], index: 4, kind: output, shape index: {1}]   ;;  %s293_s3 = inlined_call_operand.vmem [shape: s32[16,1], index: 3, kind: output, shape index: {0}]  }
   0x1   :  { %v21_v0 = vld [vmem:[%s289_s1 + $0x18] sm:$0xff]  ;;  %v20_v1 = vld [vmem:[%s289_s1 + $0x10] sm:$0xff]  ;;  %v16_v2 = vld [vmem:[%s290_s0] sm:$0xff] }
   0x2   :  { %198 = vmatprep.subr.mxu0 %v21_v0  ;;  %v19_v3 = vld [vmem:[%s289_s1 + $0x8] sm:$0xff]  ;;  %206 = vmatprep.mubr.msk.f32.mxu0 %vm29_vm0, %v16_v2  ;;  %v18_v4 = vld [vmem:[%s289_s1] sm:$0xff]  ;;  %v141_v32 = vand.u32 127, %v140_v31 }
   0x3   :  { %199 = vmatpush3.msra.mxu0 %v21_v0  ;;  %v17_v5 = vld [vmem:[%s290_s0 + $0x8] sm:$0xff]  ;;  %v189_v7 = vld [vmem:[%s291_s2] ss:$0 sm:$0xff] }
   0x4   :  { %200 = vmatprep.subr.mxu0 %v20_v1 }
   0x5   :  { %201 = vmatpush3.msra.mxu0 %v20_v1 }
   0x6   :  { %202 = vmatprep.subr.mxu0 %v19_v3 }
   0x7   :  { %203 = vmatpush3.msra.mxu0 %v19_v3 }
   0x8   :  { %204 = vmatprep.subr.mxu0 %v18_v4 }
   0x9   :  { %205 = vmatpush3.msra.mxu0 %v18_v4 }
   0xa   :  { %207 = vmatmul.mubr.msk.f32.vlgmr.msra.gmra.mxu0 %vm29_vm0, %v17_v5 }
  0xca   :  { %v208_v6 = vpop.f32.mrf.mxu0 }
  0xcb   :  { %v108_v10 = vadd.f32 %v208_v6, %v189_v7 }
  0xcc   :  { %v102_v8 = vpop.f32.mrf.mxu0 }
  0xcd   :  { %v103_v9 = vadd.f32 %v189_v7, %v102_v8  ;;  %v115_v12 = vsel %vm111_vm1, %v108_v10, -inf }
  0xcf   :  { %v112_v11 = vsel %vm111_vm1, %v103_v9, -inf }
  0xd0   :  { %113 = vmax.xlane.f32.xlu0 %v112_v11 }
  0xd4   :  { %116 = vmax.xlane.f32.xlu0 %v115_v12 }
 0x159   :  { %v114_v13 = vpop.xlane.xlu0 %113 }
 0x15a   :  { %v118_v14 = vsub.f32 %v103_v9, %v114_v13 }
 0x15c   :  { %v120_v15 = vmul.f32 1.442695, %v118_v14 }
 0x15d   :  { %v117_v16 = vpop.xlane.xlu0 %116 }
 0x15e   :  { %209 = vpow2.f32 %v120_v15  ;;  %v119_v17 = vsub.f32 %v108_v10, %v117_v16 }
 0x160   :  { %v122_v18 = vmul.f32 1.442695, %v119_v17 }
 0x162   :  { %211 = vpow2.f32 %v122_v18 }
 0x16b   :  { %v210_v19 = vpop.eup %209 }
 0x16c   :  { %v124_v20 = vsel %vm111_vm1, %v210_v19, 0.0 }
 0x16d   :  { %125 = vadd.xlane.f32.xlu1 %v124_v20 }
 0x16f   :  { %v212_v21 = vpop.eup %211 }
 0x170   :  { %v127_v22 = vsel %vm111_vm1, %v212_v21, 0.0 }
 0x171   :  { %128 = vadd.xlane.f32.xlu1 %v127_v22 }
 0x1f6   :  { %v126_v23 = vpop.xlane.xlu1 %125 }
 0x1f7   :  { %213 = vrcp.f32 %v126_v23 }
 0x1fa   :  { %v129_v24 = vpop.xlane.xlu1 %128 }
 0x1fb   :  { %215 = vrcp.f32 %v129_v24 }
 0x204   :  { %v214_v25 = vpop.eup %213 }
 0x205   :  { %v132_v26 = vmul.f32 %v214_v25, %v210_v19 }
 0x207   :  { %v134_v27 = vsel %vm111_vm1, %v132_v26, -inf }
 0x208   :  { %v216_v28 = vpop.eup %215  ;;  %135 = vmax.xlane.f32.xlu0 %v134_v27 }
 0x209   :  { %v133_v29 = vmul.f32 %v216_v28, %v212_v21 }
 0x20b   :  { %v137_v30 = vsel %vm111_vm1, %v133_v29, -inf }
 0x20c   :  { %138 = vmax.xlane.f32.xlu1 %v137_v30 }
 0x291   :  { %v136_v33 = vpop.xlane.xlu0 %135 }
 0x292   :  { %vm142_vm3 = vcmp.ge.f32.partialorder %v132_v26, %v136_v33  ;;  %179 = vst.msk [vmem:[%s292_s4] sm:$0xff] %vm176_vm2, %v136_v33 }
 0x293   :  { %v144_v34 = vsel %vm142_vm3, %v141_v32, 4 }
 0x294   :  { %v146_v35 = vsel %vm111_vm1, %v144_v34, 2147483647 }
 0x295   :  { %v139_v36 = vpop.xlane.xlu1 %138  ;;  %v148_v37 = vshra.s32 %v146_v35, 16  ;;  %v147_v43 = vand.u32 65535, %v146_v35 }
 0x296   :  { %vm143_vm4 = vcmp.ge.f32.partialorder %v133_v29, %v139_v36  ;;  %180 = vst.msk [vmem:[%s292_s4 + $0x8] sm:$0xff] %vm176_vm2, %v139_v36 }
 0x297   :  { %v145_v38 = vsel %vm143_vm4, %v141_v32, 4  ;;  %v150_v39 = vcvt.s32.f32 %v148_v37  ;;  %v149_v45 = vcvt.s32.f32 %v147_v43 }
 0x298   :  { %v161_v40 = vsel %vm111_vm1, %v145_v38, 2147483647 }
 0x299   :  { %151 = vmin.xlane.f32.xlu0 %v150_v39  ;;  %v163_v41 = vshra.s32 %v161_v40, 16  ;;  %v162_v46 = vand.u32 65535, %v161_v40 }
 0x29b   :  { %v165_v42 = vcvt.s32.f32 %v163_v41  ;;  %v164_v49 = vcvt.s32.f32 %v162_v46 }
 0x29d   :  { %166 = vmin.xlane.f32.xlu1 %v165_v42 }
 0x322   :  { %v152_v44 = vpop.xlane.xlu0 %151 }
 0x323   :  { %vm153_vm5 = vcmp.eq.f32.partialorder %v150_v39, %v152_v44  ;;  %v158_v51 = vcvt.f32.s32 %v152_v44 }
 0x324   :  { %v154_v47 = vsel %vm153_vm5, %v149_v45, inf }
 0x325   :  { %155 = vmin.xlane.f32.xlu0 %v154_v47  ;;  %v159_v53 = vshll.u32 %v158_v51, 16 }
 0x326   :  { %v167_v48 = vpop.xlane.xlu1 %166 }
 0x327   :  { %vm168_vm6 = vcmp.eq.f32.partialorder %v165_v42, %v167_v48  ;;  %v173_v54 = vcvt.f32.s32 %v167_v48 }
 0x328   :  { %v169_v50 = vsel %vm168_vm6, %v164_v49, inf }
 0x329   :  { %170 = vmin.xlane.f32.xlu1 %v169_v50  ;;  %v174_v58 = vshll.u32 %v173_v54, 16 }
 0x3ae   :  { %v156_v52 = vpop.xlane.xlu0 %155 }
 0x3af   :  { %v157_v55 = vcvt.f32.s32 %v156_v52 }
 0x3b1   :  { %v160_v56 = vadd.s32 %v159_v53, %v157_v55 }
 0x3b2   :  { %v171_v57 = vpop.xlane.xlu1 %170 }
 0x3b3   :  { %177 = vst.msk [vmem:[%s293_s3] sm:$0xff] %vm176_vm2, %v160_v56  ;;  %v172_v59 = vcvt.f32.s32 %v171_v57 }
 0x3b5   :  { %v175_v60 = vadd.s32 %v174_v58, %v172_v59 }
 0x3b7   :  { %178 = vst.msk [vmem:[%s293_s3 + $0x8] sm:$0xff] %vm176_vm2, %v175_v60 }

// kernel: switch_ffn_forward.3
= control target key start
LH: loop header
LB: loop body
LE: loop exit
PB: predicated region body
PF: predicated region fallthrough
CT: control target
= control target key end

     0   :  { %s1060_s0 = inlined_call_operand.vmem [shape: s32[5], index: 0, kind: input, shape index: {}]   ;;  %s1061_s4 = inlined_call_operand.vmem [shape: bf16[16,32], index: 4, kind: input, shape index: {}]   ;;  %s1062_s5 = inlined_call_operand.vmem [shape: bf16[4,32,32], index: 5, kind: input, shape index: {}]   ;;  %s1063_s6 = inlined_call_operand.vmem [shape: f32[4,1,32], index: 6, kind: input, shape index: {}]   ;;  %s1064_s7 = inlined_call_operand.vmem [shape: bf16[4,32,32], index: 7, kind: input, shape index: {}]   ;;  %s1065_s8 = inlined_call_operand.vmem [shape: f32[4,1,32], index: 8, kind: input, shape index: {}]   ;;  %s1066_s9 = inlined_call_operand.hbm [shape: f32[16,32], index: 9, kind: output, shape index: {}]   ;;  %s1067_s1 = inlined_call_operand.vmem [shape: s32[5], index: 1, kind: input, shape index: {}]   ;;  %s1068_s2 = inlined_call_operand.vmem [shape: s32[5], index: 2, kind: input, shape index: {}]   ;;  %s1069_s3 = inlined_call_operand.vmem [shape: s32[5], index: 3, kind: input, shape index: {}]  }
   0x1   :  { %s14_s11 = sshll.u32 %s1060_s0, 4  ;;  %s18_s14 = sshll.u32 %s1067_s1, 4  ;;  %s15_s11 = int_to_ptr.vmem [resolvable:$true] %s14_s11  ;;  %s19_s14 = int_to_ptr.vmem [resolvable:$true] %s18_s14 }
   0x2   :  { %s728_s15 = scalar_lea.vmem %s15_s11, 16  ;;  %p733_p1 = scmp.lt.s32.totalorder %s15_s11, %s15_s11 }
   0x3   :  { %p729_p0 = scmp.ne.s32.totalorder %s15_s11, %s728_s15  ;;  %p734_p2 = scmp.lt.s32.totalorder %s728_s15, %s728_s15 }
   0x5   :  { %p735_p3 = por %p734_p2, %p733_p1 }
   0x7   :  { %p736_p4 = pnand %p735_p3, %p729_p0 }
   0x9   :  { %739 = shalt.err (!%p736_p4)  }
   0xa   :  { %s840_s16 = smov [#allocation3]   ;;  %s740_s17 = scalar_lea.vmem %s19_s14, 16 }
   0xb   :  { %17 = dma.vmem_to_smem %s15_s11, 16, %s840_s16, [#allocation2] }
   0xc   :  { %p741_p5 = scmp.ne.s32.totalorder %s19_s14, %s740_s17  ;;  %p745_p6 = scmp.lt.s32.totalorder %s19_s14, %s19_s14 }
   0xd   :  { %p746_p7 = scmp.lt.s32.totalorder %s740_s17, %s740_s17 }
   0xf   :  { %p747_p8 = por %p746_p7, %p745_p6 }
  0x11   :  { %p748_p9 = pnand %p747_p8, %p741_p5 }
  0x13   :  { %751 = shalt.err (!%p748_p9)  }
  0x14   :  { %s841_s0 = smov [#allocation4]   ;;  %s22_s19 = sshll.u32 %s1068_s2, 4  ;;  %s23_s19 = int_to_ptr.vmem [resolvable:$true] %s22_s19 }
  0x15   :  { %21 = dma.vmem_to_smem %s19_s14, 16, %s841_s0, [#allocation2] }
  0x16   :  { %s26_s22 = sshll.u32 %s1069_s3, 4  ;;  %s752_s23 = scalar_lea.vmem %s23_s19, 16  ;;  %s27_s22 = int_to_ptr.vmem [resolvable:$true] %s26_s22 }
  0x17   :  { %p753_p10 = scmp.ne.s32.totalorder %s23_s19, %s752_s23  ;;  %p757_p11 = scmp.lt.s32.totalorder %s23_s19, %s23_s19 }
  0x18   :  { %p758_p12 = scmp.lt.s32.totalorder %s752_s23, %s752_s23 }
  0x1a   :  { %p759_p13 = por %p758_p12, %p757_p11 }
  0x1c   :  { %p760_p0 = pnand %p759_p13, %p753_p10 }
  0x1e   :  { %763 = shalt.err (!%p760_p0)  }
  0x1f   :  { %s842_s24 = smov [#allocation5]   ;;  %s764_s25 = scalar_lea.vmem %s27_s22, 16 }
  0x20   :  { %25 = dma.vmem_to_smem %s23_s19, 16, %s842_s24, [#allocation2] }
  0x21   :  { %p765_p1 = scmp.ne.s32.totalorder %s27_s22, %s764_s25  ;;  %p769_p2 = scmp.lt.s32.totalorder %s27_s22, %s27_s22 }
  0x22   :  { %p770_p3 = scmp.lt.s32.totalorder %s764_s25, %s764_s25 }
  0x24   :  { %p771_p4 = por %p770_p3, %p769_p2 }
  0x26   :  { %p772_p5 = pnand %p771_p4, %p765_p1 }
  0x28   :  { %775 = shalt.err (!%p772_p5)  }
  0x29   :  { %s843_s2 = smov [#allocation6]  }
  0x2a   :  { %29 = dma.vmem_to_smem %s27_s22, 16, %s843_s2, [#allocation2] }
  0x2b   :  { %818 = dma.done.wait [#allocation2], 64 }
  0x2c   :  { %819 = vsyncadd [#allocation2], 4294967232 }
  0x2d   :  { %31 = sfence }
  0x2e   :  { %32 = vsyncpa [#allocation8], 0 }
  0x2f   :  { %34 = vsyncpa [#allocation8 + $0x1], 0  ;;  %s910_s3 = smov 0   ;;  %s912_s26 = smov 0  }
  0x30   :  { %s914_s27 = smov 0   ;;  %s916_s28 = smov 0  }
  0x31 LB: > { %1075 = sst [smem:[#allocation12_spill]] %s834_s27  ;;  %s931_s29 = sadd.s32 4294967295, %s838_s28   ;;  %s838_s28 = sphi %s916_s28, %s1083_s28   ;;  %s834_s27 = sphi %s914_s27, %s1085_s27   ;;  %s830_s26 = sphi %s912_s26, %s1087_s26   ;;  %s826_s3 = sphi %s910_s3, %s1086_s3  }
  0x32   : > { %s628_s30 = sadd.s32 4294967294, %s838_s28   ;;  %s935_s10 = sadd.s32 1, %s838_s28  }
  0x33   : > { %1076 = sst [smem:[#allocation13_spill]] %s935_s10  ;;  %p199_p6 = scmp.ne.s32.totalorder %s834_s27, %s830_s26 }
  0x34   : > { %s184_s11 = sld [smem:[#allocation3 + %s838_s28]]  ;;  %p200_p7 = scmp.eq.s32.totalorder %s931_s29, 4 }
  0x35   : > { %s185_s12 = sld [smem:[#allocation3 + %s935_s10]]  ;;  %p205_p8 = scmp.ne.s32.totalorder %s830_s26, %s826_s3 }
  0x36   : > { %p206_p9 = scmp.eq.s32.totalorder %s628_s30, 4  ;;  %p944_p10 = por %p200_p7, %p199_p6 }
  0x37   : > { %p631_p11 = scmp.ge.s32.totalorder %s838_s28, 1  ;;  %p269_p13 = scmp.lt.s32.totalorder %s838_s28, 6 }
  0x38   : > { %p949_p12 = por %p206_p9, %p205_p8  ;;  %s189_s15 = sadd.s32 1, %s834_s27 }
  0x39   : > { %p270_p0 = pnand %p631_p11, %p269_p13 }
  0x3a   : > { %s1078_s14 = scalar_select %p949_p12, 1, 0 }
  0x3b   : > { %s186_s16 = ssub.s32 %s184_s11, %s185_s12  ;;  %s1070_s0 = sand.u32 (!%p270_p0), 1, %s830_s26  }
  0x3c   : > { %1079 = sst [smem:[#allocation14_spill]] %s1078_s14  ;;  %p187_p1 = scmp.eq.s32.totalorder %s186_s16, 0 }
  0x3d   : > { %273 = sbr.rel (%p270_p0) target bundleno = 504 (0x1f8), region = 40  ;;  %s317_s1 = sld [smem:[#allocation3 + %s931_s29]] (!%p270_p0) }
  0x3e   : > { %s956_s17 = scalar_select %p187_p1, %s834_s27, %s189_s15  }
  0x3f   : > { %s632_s18 = sshll.u32 (!%p270_p0), %s1070_s0, 3  ;;  %s323_s19 = sld [smem:[#allocation4 + %s931_s29]] (!%p270_p0) }
  0x40   : > { %1080 = sst [smem:[#allocation15_spill]] %s956_s17 }
  0x41   : > { %s330_s20 = sld [smem:[#allocation4 + %s931_s29]] (!%p270_p0) }
  0x42   : > { %s335_s21 = sld [smem:[#allocation4 + %s931_s29]] }
  0x43   : > { %s349_s22 = sld [smem:[#allocation5 + %s931_s29]]  ;;  %p318_p2 = scmp.lt.s32.totalorder %s317_s1, 1 }
  0x44   : > { %s342_s23 = sld [smem:[#allocation4 + %s931_s29]] }
  0x45   : > { %p324_p3 = scmp.lt.s32.totalorder %s323_s19, 3  ;;  %s1089_s1 = smov (!%p318_p2, %s317_s1), 1 }
  0x46   : > { %s633_s24 = sshll.u32 %s1089_s1, 2 }
  0x47   : > { %s1091_s19 = smov (!%p324_p3, %s323_s19), 3  ;;  %p331_p4 = scmp.lt.s32.totalorder %s330_s20, 3 }
  0x48   : > { %s321_s30 = scalar_lea.vmem %s1061_s4, %s633_s24  ;;  %s652_s11 = sshll.u32 %s1091_s19, 4 }
  0x49   : > { %s328_s16 = scalar_lea.vmem %s1062_s5, %s652_s11  ;;  %p336_p5 = scmp.lt.s32.totalorder %s335_s21, 3 }
  0x4a   : > { %s1093_s20 = smov (!%p331_p4, %s330_s20), 3  ;;  %p343_p6 = scmp.lt.s32.totalorder %s342_s23, 3 }
  0x4b   : > { %s1095_s21 = smov (!%p336_p5, %s335_s21), 3  ;;  %s333_s27 = scalar_lea.vmem %s1063_s6, %s1093_s20 }
  0x4c   : > { %s653_s1 = sshll.u32 %s1095_s21, 4  ;;  %s1097_s23 = smov (!%p343_p6, %s342_s23), 3 }
  0x4d   : > { %s340_s24 = scalar_lea.vmem %s1064_s7, %s653_s1  ;;  %s345_s2 = scalar_lea.vmem %s1065_s8, %s1097_s23 }
  0x4e   : > { %s988_s11 = scalar_lea.vmem [#allocation7], %s632_s18  ;;  %p638_p7 = scmp.ne.s32.totalorder %s349_s22, 1 }
  0x50   : > { %353 = sbr.rel (%p638_p7) target bundleno = 87 (0x57), region = 44 }
  0x55   : > { %vm354_vm0 = vcmask 261120   ;;  %v844_v0 = vmov 0.0  }
  0x56   : > { %355 = vst.msk [vmem:[%s988_s11] sm:$0xff] %vm354_vm0, %v844_v0 }
  0x57 PF: > { %v724_v1 = vld [vmem:[%s328_s16 + $0x8] sm:$0xff]   ;;  %v845_v2 = vmov 0.0   ;;  %v725_v3 = vld [vmem:[%s328_s16] sm:$0xff]   ;;  %vm846_vm1 = vmmov 0   ;;  %vm395_vm2 = vcmask 261120   ;;  %s356_s17 = sld [smem:[#allocation4 + %s931_s29]]  ;;  %v362_v15 = vlaneseq }
  0x58   : > { %660 = vmatprep.subr.bf16.mxu0 %v845_v2  ;;  %668 = vmatprep.subr.bf16.mxu1 %v845_v2  ;;  %v371_v4 = vld [vmem:[%s321_s30] sm:$0xf]  ;;  %v726_v5 = vld [vmem:[%s340_s24 + $0x8] sm:$0xff]   ;;  %s357_s0 = sld [smem:[#allocation3 + %s931_s29]]  ;;  %s1099_s29 = smov (!%p944_p10, %s931_s29), 0 }
  0x59   : > { %661 = vmatpush3.bf16.msra.mxu0 %v724_v1  ;;  %664 = vmatprep.mubr.msk.bf16.mxu0 %vm846_vm1, %v845_v2  ;;  %v727_v6 = vld [vmem:[%s340_s24] sm:$0xff]   ;;  %s676_s22 = scalar_select %p944_p10, [#allocation3], [#allocation9]  ;;  %v363_v16 = vshrl.u32 %v362_v15, 7 }
  0x5a   : > { %662 = vmatprep.subr.bf16.mxu0 %v845_v2  ;;  %672 = vmatprep.mubr.msk.bf16.mxu1 %vm846_vm1, %v845_v2  ;;  %v640_v7 = vld [vmem:[%s333_s27] ss:$0 sm:$0xff]  ;;  %s527_s1 = sshll.u32 %s988_s11, 4  ;;  %s1081_s23 = sand.u32 1, %s830_s26   ;;  %s1017_s1 = int_to_ptr.vmem [resolvable:$true] %s527_s1 }
  0x5b   : > { %669 = vmatpush3.bf16.msra.mxu1 %v726_v5  ;;  %s520_s30 = sld [smem:[%s676_s22 + %s1099_s29]]  ;;  %v644_v21 = vld [vmem:[%s345_s2] ss:$0 sm:$0xff]  ;;  %s513_s25 = scalar_lea.sflag [#allocation8], %s1081_s23 }
  0x5c   : > { %670 = vmatprep.subr.bf16.mxu1 %v845_v2  ;;  %s776_s2 = scalar_lea.vmem %s1017_s1, 128  ;;  %s847_s10 = smov [#allocation7]  }
  0x5d   : > { %663 = vmatpush3.bf16.msra.mxu0 %v725_v3  ;;  %s360_s18 = sadd.s32 1, %s356_s17  ;;  %s359_s21 = sld [smem:[#allocation6 + %s356_s17]]  ;;  %v507_v23 = vld [vmem:[%s988_s11] sm:$0xff] }
  0x5e   : > { %s639_s20 = sshll.u32 %s357_s0, 3  ;;  %s361_s27 = sld [smem:[#allocation6 + %s360_s18]] }
  0x5f   : > { %671 = vmatpush3.bf16.msra.mxu1 %v727_v6  ;;  %v364_v17 = vstv %s639_s20  ;;  %p777_p8 = scmp.ne.s32.totalorder %s1017_s1, %s776_s2  ;;  %s780_s14 = sshll.u32 %s847_s10, 4  ;;  %s781_s14 = int_to_ptr.vmem [resolvable:$false] %s780_s14 }
  0x60   : > { %665 = vmatmul.mubr.msk.bf16.vlgmr.msra.gmra.mxu0 %vm395_vm2, %v371_v4  ;;  %v365_v18 = vadd.s32 %v364_v17, %v363_v16  ;;  %s782_s17 = scalar_lea.vmem %s781_s14, 256  ;;  %p783_p13 = scmp.lt.s32.totalorder %s1017_s1, %s781_s14 }
  0x61   : > { %s649_s16 = sshll.u32 %s520_s30, 7  ;;  %p778_p9 = pnand %p777_p8, %p944_p10 }
  0x62   : > { %s1015_s19 = scalar_lea.hbm %s1066_s9, %s649_s16  ;;  %p784_p0 = scmp.lt.s32.totalorder %s782_s17, %s776_s2 }
  0x63   : > { %v366_v19 = vstv %s359_s21  ;;  %p779_p11 = pneg %p778_p9 }
  0x64   : > { %v368_v20 = vstv %s361_s27  ;;  %vm367_vm3 = vcmp.ge.s32.totalorder %v365_v18, %v366_v19  ;;  %p785_p1 = por %p784_p0, %p783_p13 }
  0x65   : > { %vm369_vm4 = vcmp.lt.s32.totalorder %v365_v18, %v368_v20 }
  0x66   : > { %vm370_vm5 = vmand %vm367_vm3, %vm369_vm4  ;;  %p786_p2 = pnand %p785_p1, %p779_p11 }
 0x120   : > { %v433_v8 = vpop.f32.mrf.mxu0 }
 0x121   : > { %v434_v9 = vadd.f32 %v640_v7, %v433_v8 }
 0x122   : > { %v666_v10 = vpop.f32.mrf.mxu0 }
 0x123   : > { %v439_v11 = vmax.f32 %v434_v9, 0.0 }
 0x124   : > { %v436_v12 = vpop.f32.mrf.mxu0 }
 0x125   : > { %v440_v13 = vpack.c.bf16 %v439_v11, %v439_v11 }
 0x126   : > { %v667_v14 = vpop.f32.mrf.mxu0 }
 0x127   : > { %673 = vmatmul.mubr.msk.bf16.vlgmr.msra.gmra.mxu1 %vm395_vm2, %v440_v13 }
 0x1e7   : > { %v501_v22 = vpop.f32.mrf.mxu1 }
 0x1e8   : > { %v502_v24 = vadd.f32 %v644_v21, %v501_v22 }
 0x1e9   : > { %v674_v25 = vpop.f32.mrf.mxu1 }
 0x1ea   : > { %v510_v26 = vsel %vm370_vm5, %v502_v24, %v507_v23 }
 0x1eb   : > { %511 = vst.msk [vmem:[%s988_s11] sm:$0xff] %vm395_vm2, %v510_v26  ;;  %v504_v27 = vpop.f32.mrf.mxu1 }
 0x1ec   : > { %789 = shalt.err (!%p786_p2)
}
 0x1ed   : > { %s790_s11 = scalar_lea.hbm %s1015_s19, 128  ;;  %s794_s21 = scalar_lea.hbm %s1066_s9, 256 }
 0x1ee   : > { %p791_p3 = scmp.ne.s32.totalorder %s1015_s19, %s790_s11  ;;  %p795_p6 = scmp.lt.s32.totalorder %s1015_s19, %s1066_s9 }
 0x1ef   : > { %p796_p7 = scmp.lt.s32.totalorder %s794_s21, %s790_s11 }
 0x1f0   : > { %p792_p4 = pnand %p791_p3, %p944_p10 }
 0x1f1   : > { %p797_p8 = por %p796_p7, %p795_p6 }
 0x1f2   : > { %p793_p5 = pneg %p792_p4 }
 0x1f4   : > { %p798_p9 = pnand %p797_p8, %p793_p5 }
 0x1f6   : > { %801 = shalt.err (!%p798_p9)
}
 0x1f7   : > { %678 = dma.vmem_to_hbm [thread:$0]  (%p944_p10), %s1017_s1, 128, %s1015_s19, %s513_s25   ;;  %v675_v28 = vpop.f32.mrf.mxu1 }
 0x1f8 PF: > { %p684_p11 = scmp.ge.s32.totalorder %s838_s28, 2  ;;  %s539_s30 = sand.u32 1, %s826_s3  }
 0x1f9   : > { %s540_s12 = scalar_lea.sflag [#allocation8], %s539_s30 }
 0x1fa   : > { %p681_p13 = pnand %p684_p11, %p949_p12 }
 0x1fc   : > { %p682_p0 = pneg %p681_p13 }
 0x1fe   : > { %821 = dma.done.wait (%p682_p0), %s540_s12, 128  }
 0x1ff   : > { %823 = vsyncadd (%p682_p0), %s540_s12, 4294967168  ;;  %s1083_s28 = sld [smem:[#allocation13_spill]]  ;;  %s1086_s3 = smov %s830_s26 }
 0x200   : > { %s1084_s15 = sld [smem:[#allocation12_spill]] }
 0x201   : > { %s1085_s27 = sld [smem:[#allocation15_spill]] }
 0x205   : > { %p37_p1 = scmp.ge.s32.totalorder %s1083_s28, 7  }
 0x206   : > { %s1087_s26 = smov %s1084_s15 }
 0x207   :  { %39 = sbr.rel (!%p37_p1) target bundleno = 49 (0x31), region = 91 }
 0x20c   :  { %545 = vsyncpa [#allocation8], 1 }
 0x20d   :  { %547 = vsyncpa [#allocation8 + $0x1], 1 }

</bundles_post_ra>
